<compile_context>
chip_gen: v6e
topology: v6e:2x2x1
jax: 0.10.0
libtpu: 0.0.40
codegen_flags: <defaults>
</compile_context>

<pallas_src>
import jax
import jax.numpy as jnp
from jax.experimental import pallas as pl
from jax.experimental.pallas import tpu as pltpu

IN_FEATURES = 512
OUT_FEATURES = 10
DEFAULT_BLOCK_B = 2048  # batch tile; x double-buffer = 8 MiB f32, safe on all gens


def _round_up(x, m):
    return ((x + m - 1) // m) * m


def _linear_kernel(x_ref, w_ref, b_ref, o_ref):
    # x_ref: (tb, 512) input dtype; w_ref: (512, 10) f32; b_ref: (1, 10) f32
    # o_ref: (tb, 10) f32
    x = x_ref[...]
    if x.dtype not in (jnp.dtype(jnp.float32), jnp.dtype(jnp.bfloat16)):
        # Matches `x.to(torch.float32)` for dtypes the MXU can't consume directly.
        x = x.astype(jnp.float32)
    acc = jnp.dot(x, w_ref[...], preferred_element_type=jnp.float32)
    o_ref[...] = acc + b_ref[...]  # broadcast bias over batch rows


def prepare_params(weight, bias):
    """Hoisted, once-per-model param prep: weight (10,512) -> (512,10) f32; bias -> (1,10) f32."""
    w_t = weight.T.astype(jnp.float32)                       # (512, 10)
    b_2d = bias.astype(jnp.float32).reshape(1, OUT_FEATURES)  # (1, 10)
    return w_t, b_2d


def tiny_model_forward(x, w_t, b_2d, *, block_b=DEFAULT_BLOCK_B):
    """x: (B, 512) any float dtype; w_t: (512, 10) f32; b_2d: (1, 10) f32. Returns (B, 10) f32."""
    B = x.shape[0]

    # Batch tile: large enough to amortize per-step overhead, capped so that
    # grid_b >= 2 when B > 8 (v7x megacore sharding + pipeline double-buffering),
    # and always a multiple of the sublane count (8).
    tb = min(block_b, max(8, _round_up(pl.cdiv(B, 2), 8)), _round_up(B, 8))
    grid_b = pl.cdiv(B, tb)

    x_bytes = B * IN_FEATURES * x.dtype.itemsize
    out_bytes = B * OUT_FEATURES * 4
    param_bytes = (IN_FEATURES * OUT_FEATURES + OUT_FEATURES) * 4

    return pl.pallas_call(
        _linear_kernel,
        out_shape=jax.ShapeDtypeStruct((B, OUT_FEATURES), jnp.float32),
        grid=(grid_b,),
        in_specs=[
            pl.BlockSpec((tb, IN_FEATURES), lambda i: (i, 0)),           # x tile, pipelined
            pl.BlockSpec((IN_FEATURES, OUT_FEATURES), lambda i: (0, 0)),  # weight, VMEM-resident
            pl.BlockSpec((1, OUT_FEATURES), lambda i: (0, 0)),            # bias, VMEM-resident
        ],
        out_specs=pl.BlockSpec((tb, OUT_FEATURES), lambda i: (i, 0)),
        compiler_params=pltpu.CompilerParams(
            dimension_semantics=("parallel",),  # shard batch tiles across TCs (v7x)
        ),
        cost_estimate=pl.CostEstimate(
            flops=2 * B * IN_FEATURES * OUT_FEATURES,
            transcendentals=0,
            bytes_accessed=x_bytes + out_bytes + param_bytes,
        ),
    )(x, w_t, b_2d)


def reference_forward(x, weight, bias):
    return x.astype(jnp.float32) @ weight.T.astype(jnp.float32) + bias.astype(jnp.float32)


if __name__ == "__main__":
    key = jax.random.PRNGKey(0)
    k_x, k_w, k_b = jax.random.split(key, 3)

    B = 16  # small batch; with grid split this still exercises 2 grid steps
    # PyTorch nn.Linear default init: U(-1/sqrt(in), 1/sqrt(in)); done deterministically here.
    bound = 1.0 / (IN_FEATURES ** 0.5)
    x = jax.random.normal(k_x, (B, IN_FEATURES), dtype=jnp.float32)
    weight = jax.random.uniform(k_w, (OUT_FEATURES, IN_FEATURES),
                                minval=-bound, maxval=bound, dtype=jnp.float32)
    bias = jax.random.uniform(k_b, (OUT_FEATURES,),
                              minval=-bound, maxval=bound, dtype=jnp.float32)

    # Param prep hoisted out of the per-call path (done once, reused every forward).
    w_t, b_2d = prepare_params(weight, bias)

    out = tiny_model_forward(x, w_t, b_2d)
    out = jax.block_until_ready(out)

    ref = reference_forward(x, weight, bias)
    assert out.shape == (B, OUT_FEATURES)
    assert jnp.allclose(out, ref, atol=1e-5, rtol=1e-5)

    print("KERNEL_OK")
</pallas_src>

<mosaic_0001>
module attributes {stable_mosaic.version = 11 : i64} {
  func.func @_linear_kernel(%arg0: i32, %arg1: memref<8x512xf32, #tpu.memory_space<vmem>>, %arg2: memref<512x10xf32, #tpu.memory_space<vmem>>, %arg3: memref<1x10xf32, #tpu.memory_space<vmem>>, %arg4: memref<8x10xf32, #tpu.memory_space<vmem>>) attributes {dimension_semantics = [#tpu.dimension_semantics<parallel>], iteration_bounds = array<i64: 2>, scalar_prefetch = 0 : i64, scratch_operands = 0 : i64, tpu.core_type = #tpu.core_type<tc>, window_params = [{transform_indices = @transform_0, window_bounds = array<i64: 8, 512>}, {pipeline_mode = #tpu.pipeline_mode<synchronous>, transform_indices = @transform_1, window_bounds = array<i64: 512, 10>}, {pipeline_mode = #tpu.pipeline_mode<synchronous>, transform_indices = @transform_2, window_bounds = array<i64: 1, 10>}, {transform_indices = @transform_3, window_bounds = array<i64: 8, 10>}]} {
    %c0 = arith.constant 0 : index
    %c0_0 = arith.constant 0 : index
    %0 = vector.load %arg1[%c0, %c0_0] : memref<8x512xf32, #tpu.memory_space<vmem>>, vector<8x512xf32>
    %c0_1 = arith.constant 0 : index
    %c0_2 = arith.constant 0 : index
    %1 = vector.load %arg2[%c0_1, %c0_2] : memref<512x10xf32, #tpu.memory_space<vmem>>, vector<512x10xf32>
    %cst = arith.constant dense<0.000000e+00> : vector<8x10xf32>
    %2 = tpu.matmul %0, %1, %cst {dimension_numbers = #tpu.dot_dimension_numbers<[1], [0], [0], [1], [0, 0, 1, 1], [], []>} : vector<8x512xf32>, vector<512x10xf32>, vector<8x10xf32> -> vector<8x10xf32>
    %c0_3 = arith.constant 0 : index
    %c0_4 = arith.constant 0 : index
    %3 = vector.load %arg3[%c0_3, %c0_4] : memref<1x10xf32, #tpu.memory_space<vmem>>, vector<1x10xf32>
    %4 = vector.broadcast %3 : vector<1x10xf32> to vector<8x10xf32>
    %5 = arith.addf %2, %4 : vector<8x10xf32>
    %c0_5 = arith.constant 0 : index
    %c0_6 = arith.constant 0 : index
    %6 = vector.load %arg4[%c0_5, %c0_6] : memref<8x10xf32, #tpu.memory_space<vmem>>, vector<8x10xf32>
    tpu.vector_store %arg4[%c0_5, %c0_6], %5 {strides = array<i32>} : memref<8x10xf32, #tpu.memory_space<vmem>>, vector<8x10xf32>,
    return
  }
  func.func @transform_0(%arg0: i32) -> (i32, i32) {
    %c0_i32 = arith.constant 0 : i32
    %c0_i32_0 = arith.constant 0 : i32
    return %arg0, %c0_i32 : i32, i32
  }
  func.func @transform_1(%arg0: i32) -> (i32, i32) {
    %c0_i32 = arith.constant 0 : i32
    %c0_i32_0 = arith.constant 0 : i32
    %c0_i32_1 = arith.constant 0 : i32
    return %c0_i32, %c0_i32_0 : i32, i32
  }
  func.func @transform_2(%arg0: i32) -> (i32, i32) {
    %c0_i32 = arith.constant 0 : i32
    %c0_i32_0 = arith.constant 0 : i32
    %c0_i32_1 = arith.constant 0 : i32
    return %c0_i32, %c0_i32_0 : i32, i32
  }
  func.func @transform_3(%arg0: i32) -> (i32, i32) {
    %c0_i32 = arith.constant 0 : i32
    %c0_i32_0 = arith.constant 0 : i32
    return %arg0, %c0_i32 : i32, i32
  }
}

</mosaic_0001>

<bundles_post_ra>
// kernel: tpu_custom_call.1
= control target key start
LH: loop header
LB: loop body
LE: loop exit
PB: predicated region body
PF: predicated region fallthrough
CT: control target
= control target key end

     0   :  { %8 = vsyncpa [#allocation3], 0  ;;  %s951_s0 = inlined_call_operand.vmem [shape: f32[16,512], index: 0, kind: input, shape index: {}]   ;;  %s952_s1 = inlined_call_operand.vmem [shape: f32[512,10], index: 1, kind: input, shape index: {}]   ;;  %s953_s2 = inlined_call_operand.vmem [shape: f32[1,10], index: 2, kind: input, shape index: {}]   ;;  %s954_s3 = inlined_call_operand.hbm [shape: f32[16,10], index: 3, kind: output, shape index: {}]  }
   0x1   :  { %10 = vsyncpa [#allocation3 + $0x1], 0  ;;  %s664_s12 = smov 0   ;;  %s666_s13 = smov 0  }
   0x2   :  { %s668_s14 = smov 0   ;;  %s670_s15 = smov 0  }
   0x3 LB: > { %s685_s16 = sadd.s32 4294967295, %s641_s15   ;;  %s459_s17 = sadd.s32 4294967294, %s641_s15   ;;  %s641_s15 = sphi %s670_s15, %s960_s15   ;;  %s637_s14 = sphi %s668_s14, %s959_s14   ;;  %s633_s13 = sphi %s666_s13, %s958_s13   ;;  %s629_s12 = sphi %s664_s12, %s957_s12  }
   0x4   : > { %s689_s18 = sadd.s32 1, %s641_s15   ;;  %s91_s19 = sadd.s32 1, %s637_s14 }
   0x5   : > { %s88_s20 = ssub.s32 %s641_s15, %s689_s18  ;;  %p101_p0 = scmp.ne.s32.totalorder %s637_s14, %s633_s13 }
   0x6   : > { %p89_p1 = scmp.eq.s32.totalorder %s88_s20, 0  ;;  %p102_p2 = scmp.eq.s32.totalorder %s685_s16, 1 }
   0x7   : > { %p107_p3 = scmp.ne.s32.totalorder %s633_s13, %s629_s12  ;;  %p108_p4 = scmp.eq.s32.totalorder %s459_s17, 1 }
   0x8   : > { %s700_s21 = scalar_select %p89_p1, %s637_s14, %s91_s19  }
   0x9   : > { %p702_p5 = por %p102_p2, %p101_p0  ;;  %p706_p6 = por %p108_p4, %p107_p3 }
   0xa   : > { %p462_p7 = scmp.ge.s32.totalorder %s641_s15, 1  ;;  %p140_p8 = scmp.lt.s32.totalorder %s641_s15, 3 }
   0xc   : > { %p141_p9 = pnand %p462_p7, %p140_p8 }
   0xd   : > { %p164_p10 = scmp.lt.s32.totalorder (!%p141_p9), %s685_s16, 1  ;;  %s161_s4 = sand.u32 (!%p141_p9), 1, %s633_s13  }
   0xe   : > { %144 = sbr.rel (%p141_p9) target bundleno = 268 (0x10c), region = 32  ;;  %s463_s5 = sshll.u32 (!%p141_p9), %s161_s4, 3 }
   0xf   : > { %s468_s8 = sshll.u32 (!%p141_p9), %s685_s16, 7  ;;  %s387_s25 = scalar_lea.sflag (!%p141_p9), [#allocation3], %s161_s4 }
  0x10   : > { %s398_s24 = scalar_lea.hbm (!%p141_p9), %s954_s3, %s468_s8  ;;  %s643_s27 = smov (!%p141_p9), [#allocation2]  }
  0x13   : > { %v204_v0 = vld [vmem:[%s952_s1 + $0xf8] sm:$0xff]  ;;  %v203_v4 = vld [vmem:[%s952_s1 + $0xf0] sm:$0xff]  ;;  %v202_v8 = vld [vmem:[%s952_s1 + $0xe8] sm:$0xff]  ;;  %s848_s19 = scalar_select %p164_p10, %s685_s16, 1  ;;  %vm384_vm0 = vcmask 80896  }
  0x14   : > { %v236_v1 = vld [vmem:[%s952_s1 + $0x1f8] sm:$0xff]  ;;  %472 = vmatprep.subr.mxu0 %v204_v0  ;;  %v235_v5 = vld [vmem:[%s952_s1 + $0x1f0] sm:$0xff]  ;;  %v234_v9 = vld [vmem:[%s952_s1 + $0x1e8] sm:$0xff]  ;;  %s585_s16 = sshll.u32 %s643_s27, 4  ;;  %s586_s16 = int_to_ptr.vmem [resolvable:$false] %s585_s16 }
  0x15   : > { %v188_v2 = vld [vmem:[%s952_s1 + $0x78] sm:$0xff]  ;;  %507 = vmatprep.subr.mxu1 %v236_v1  ;;  %v187_v6 = vld [vmem:[%s952_s1 + $0x70] sm:$0xff]  ;;  %v186_v10 = vld [vmem:[%s952_s1 + $0x68] sm:$0xff]  ;;  %s471_s17 = sshll.u32 %s848_s19, 5  ;;  %s587_s28 = scalar_lea.vmem %s586_s16, 256 }
  0x16   : > { %v220_v3 = vld [vmem:[%s952_s1 + $0x178] sm:$0xff]  ;;  %473 = vmatpush3.msra.mxu0 %v188_v2  ;;  %v219_v7 = vld [vmem:[%s952_s1 + $0x170] sm:$0xff]  ;;  %v218_v11 = vld [vmem:[%s952_s1 + $0x168] sm:$0xff]  ;;  %s168_s9 = scalar_lea.vmem %s951_s0, %s471_s17 }
  0x17   : > { %508 = vmatpush3.msra.mxu1 %v220_v3  ;;  %474 = vmatprep.subr.mxu0 %v203_v4  ;;  %v201_v12 = vld [vmem:[%s952_s1 + $0xe0] sm:$0xff]  ;;  %v200_v16 = vld [vmem:[%s952_s1 + $0xd8] sm:$0xff]  ;;  %v199_v20 = vld [vmem:[%s952_s1 + $0xd0] sm:$0xff] }
  0x18   : > { %509 = vmatprep.subr.mxu1 %v235_v5  ;;  %475 = vmatpush3.msra.mxu0 %v187_v6  ;;  %v233_v13 = vld [vmem:[%s952_s1 + $0x1e0] sm:$0xff]  ;;  %v232_v17 = vld [vmem:[%s952_s1 + $0x1d8] sm:$0xff]  ;;  %v231_v21 = vld [vmem:[%s952_s1 + $0x1d0] sm:$0xff] }
  0x19   : > { %510 = vmatpush3.msra.mxu1 %v219_v7  ;;  %476 = vmatprep.subr.mxu0 %v202_v8  ;;  %v185_v14 = vld [vmem:[%s952_s1 + $0x60] sm:$0xff]  ;;  %v184_v18 = vld [vmem:[%s952_s1 + $0x58] sm:$0xff]  ;;  %v183_v22 = vld [vmem:[%s952_s1 + $0x50] sm:$0xff] }
  0x1a   : > { %511 = vmatprep.subr.mxu1 %v234_v9  ;;  %v217_v15 = vld [vmem:[%s952_s1 + $0x160] sm:$0xff]  ;;  %477 = vmatpush3.msra.mxu0 %v186_v10  ;;  %v216_v19 = vld [vmem:[%s952_s1 + $0x158] sm:$0xff]  ;;  %v215_v23 = vld [vmem:[%s952_s1 + $0x150] sm:$0xff] }
  0x1b   : > { %512 = vmatpush3.msra.mxu1 %v218_v11  ;;  %478 = vmatprep.subr.mxu0 %v201_v12  ;;  %v198_v24 = vld [vmem:[%s952_s1 + $0xc8] sm:$0xff]  ;;  %v197_v28 = vld [vmem:[%s952_s1 + $0xc0] sm:$0xff]  ;;  %v196_v32 = vld [vmem:[%s952_s1 + $0xb8] sm:$0xff] }
  0x1c   : > { %513 = vmatprep.subr.mxu1 %v233_v13  ;;  %479 = vmatpush3.msra.mxu0 %v185_v14  ;;  %v230_v25 = vld [vmem:[%s952_s1 + $0x1c8] sm:$0xff]  ;;  %v229_v29 = vld [vmem:[%s952_s1 + $0x1c0] sm:$0xff]  ;;  %v228_v33 = vld [vmem:[%s952_s1 + $0x1b8] sm:$0xff] }
  0x1d   : > { %514 = vmatpush3.msra.mxu1 %v217_v15  ;;  %480 = vmatprep.subr.mxu0 %v200_v16  ;;  %v182_v26 = vld [vmem:[%s952_s1 + $0x48] sm:$0xff]  ;;  %v181_v30 = vld [vmem:[%s952_s1 + $0x40] sm:$0xff]  ;;  %v180_v34 = vld [vmem:[%s952_s1 + $0x38] sm:$0xff] }
  0x1e   : > { %515 = vmatprep.subr.mxu1 %v232_v17  ;;  %481 = vmatpush3.msra.mxu0 %v184_v18  ;;  %v214_v27 = vld [vmem:[%s952_s1 + $0x148] sm:$0xff]  ;;  %v213_v31 = vld [vmem:[%s952_s1 + $0x140] sm:$0xff]  ;;  %v212_v35 = vld [vmem:[%s952_s1 + $0x138] sm:$0xff] }
  0x1f   : > { %516 = vmatpush3.msra.mxu1 %v216_v19  ;;  %482 = vmatprep.subr.mxu0 %v199_v20  ;;  %v195_v36 = vld [vmem:[%s952_s1 + $0xb0] sm:$0xff]  ;;  %v194_v40 = vld [vmem:[%s952_s1 + $0xa8] sm:$0xff]  ;;  %v193_v44 = vld [vmem:[%s952_s1 + $0xa0] sm:$0xff] }
  0x20   : > { %517 = vmatprep.subr.mxu1 %v231_v21  ;;  %483 = vmatpush3.msra.mxu0 %v183_v22  ;;  %v227_v37 = vld [vmem:[%s952_s1 + $0x1b0] sm:$0xff]  ;;  %v226_v41 = vld [vmem:[%s952_s1 + $0x1a8] sm:$0xff]  ;;  %v225_v45 = vld [vmem:[%s952_s1 + $0x1a0] sm:$0xff] }
  0x21   : > { %518 = vmatpush3.msra.mxu1 %v215_v23  ;;  %484 = vmatprep.subr.mxu0 %v198_v24  ;;  %v179_v38 = vld [vmem:[%s952_s1 + $0x30] sm:$0xff]  ;;  %v178_v42 = vld [vmem:[%s952_s1 + $0x28] sm:$0xff]  ;;  %v177_v46 = vld [vmem:[%s952_s1 + $0x20] sm:$0xff] }
  0x22   : > { %519 = vmatprep.subr.mxu1 %v230_v25  ;;  %485 = vmatpush3.msra.mxu0 %v182_v26  ;;  %v211_v39 = vld [vmem:[%s952_s1 + $0x130] sm:$0xff]  ;;  %v210_v43 = vld [vmem:[%s952_s1 + $0x128] sm:$0xff]  ;;  %v209_v47 = vld [vmem:[%s952_s1 + $0x120] sm:$0xff] }
  0x23   : > { %520 = vmatpush3.msra.mxu1 %v214_v27  ;;  %486 = vmatprep.subr.mxu0 %v197_v28  ;;  %v192_v48 = vld [vmem:[%s952_s1 + $0x98] sm:$0xff]  ;;  %v191_v52 = vld [vmem:[%s952_s1 + $0x90] sm:$0xff]  ;;  %v190_v56 = vld [vmem:[%s952_s1 + $0x88] sm:$0xff] }
  0x24   : > { %521 = vmatprep.subr.mxu1 %v229_v29  ;;  %487 = vmatpush3.msra.mxu0 %v181_v30  ;;  %v224_v49 = vld [vmem:[%s952_s1 + $0x198] sm:$0xff]  ;;  %v223_v53 = vld [vmem:[%s952_s1 + $0x190] sm:$0xff]  ;;  %v222_v57 = vld [vmem:[%s952_s1 + $0x188] sm:$0xff] }
  0x25   : > { %522 = vmatpush3.msra.mxu1 %v213_v31  ;;  %488 = vmatprep.subr.mxu0 %v196_v32  ;;  %v176_v50 = vld [vmem:[%s952_s1 + $0x18] sm:$0xff]  ;;  %v175_v54 = vld [vmem:[%s952_s1 + $0x10] sm:$0xff]  ;;  %v174_v58 = vld [vmem:[%s952_s1 + $0x8] sm:$0xff] }
  0x26   : > { %523 = vmatprep.subr.mxu1 %v228_v33  ;;  %489 = vmatpush3.msra.mxu0 %v180_v34  ;;  %v208_v51 = vld [vmem:[%s952_s1 + $0x118] sm:$0xff]  ;;  %v207_v55 = vld [vmem:[%s952_s1 + $0x110] sm:$0xff]  ;;  %v206_v59 = vld [vmem:[%s952_s1 + $0x108] sm:$0xff] }
  0x27   : > { %524 = vmatpush3.msra.mxu1 %v212_v35  ;;  %490 = vmatprep.subr.mxu0 %v195_v36  ;;  %v189_v60 = vld [vmem:[%s952_s1 + $0x80] sm:$0xff]  ;;  %v170_v63 = vld [vmem:[%s168_s9 + $0x8] sm:$0xff]  ;;  %v172_v1 = vld [vmem:[%s168_s9 + $0x18] sm:$0xff] }
  0x28   : > { %525 = vmatprep.subr.mxu1 %v227_v37  ;;  %491 = vmatpush3.msra.mxu0 %v179_v38  ;;  %v221_v61 = vld [vmem:[%s952_s1 + $0x180] sm:$0xff]  ;;  %v171_v3 = vld [vmem:[%s168_s9 + $0x10] sm:$0xff] }
  0x29   : > { %526 = vmatpush3.msra.mxu1 %v211_v39  ;;  %492 = vmatprep.subr.mxu0 %v194_v40  ;;  %v173_v62 = vld [vmem:[%s952_s1] sm:$0xff] }
  0x2a   : > { %527 = vmatprep.subr.mxu1 %v226_v41  ;;  %493 = vmatpush3.msra.mxu0 %v178_v42  ;;  %v205_v0 = vld [vmem:[%s952_s1 + $0x100] sm:$0xff] }
  0x2b   : > { %528 = vmatpush3.msra.mxu1 %v210_v43  ;;  %494 = vmatprep.subr.mxu0 %v193_v44  ;;  %v169_v2 = vld [vmem:[%s168_s9] sm:$0xff]  ;;  %s163_s9 = scalar_lea.vmem [#allocation2], %s463_s5 }
  0x2c   : > { %529 = vmatprep.subr.mxu1 %v225_v45  ;;  %495 = vmatpush3.msra.mxu0 %v177_v46  ;;  %v466_v6 = vld [vmem:[%s953_s2] ss:$0 sm:$0xff]  ;;  %s400_s10 = sshll.u32 %s163_s9, 4  ;;  %s401_s10 = int_to_ptr.vmem [resolvable:$true] %s400_s10 }
  0x2d   : > { %530 = vmatpush3.msra.mxu1 %v209_v47  ;;  %496 = vmatprep.subr.mxu0 %v192_v48  ;;  %s581_s26 = scalar_lea.vmem %s401_s10, 128  ;;  %p588_p0 = scmp.lt.s32.totalorder %s401_s10, %s586_s16 }
  0x2e   : > { %531 = vmatprep.subr.mxu1 %v224_v49  ;;  %497 = vmatpush3.msra.mxu0 %v176_v50  ;;  %p582_p11 = scmp.ne.s32.totalorder %s401_s10, %s581_s26  ;;  %p589_p1 = scmp.lt.s32.totalorder %s587_s28, %s581_s26 }
  0x2f   : > { %532 = vmatpush3.msra.mxu1 %v208_v51  ;;  %498 = vmatprep.subr.mxu0 %v191_v52 }
  0x30   : > { %533 = vmatprep.subr.mxu1 %v223_v53  ;;  %499 = vmatpush3.msra.mxu0 %v175_v54  ;;  %p583_p12 = pnand %p582_p11, %p702_p5  ;;  %p590_p2 = por %p589_p1, %p588_p0 }
  0x31   : > { %534 = vmatpush3.msra.mxu1 %v207_v55  ;;  %500 = vmatprep.subr.mxu0 %v190_v56 }
  0x32   : > { %535 = vmatprep.subr.mxu1 %v222_v57  ;;  %501 = vmatpush3.msra.mxu0 %v174_v58  ;;  %p584_p13 = pneg %p583_p12 }
  0x33   : > { %536 = vmatpush3.msra.mxu1 %v206_v59  ;;  %502 = vmatprep.subr.mxu0 %v189_v60 }
  0x34   : > { %537 = vmatprep.subr.mxu1 %v221_v61  ;;  %503 = vmatpush3.msra.mxu0 %v173_v62  ;;  %p591_p3 = pnand %p590_p2, %p584_p13 }
  0x35   : > { %308 = vmatprep.mubr.f32.mxu0 %v170_v63  ;;  %538 = vmatpush3.msra.mxu1 %v205_v0 }
  0x36   : > { %378 = vmatprep.mubr.f32.mxu1 %v172_v1  ;;  %309 = vmatmul.mubr.f32.vlgmr.msra.gmra.mxu0 %v169_v2 }
  0x37   : > { %379 = vmatmul.mubr.f32.vlgmr.msra.gmra.mxu1 %v171_v3 }
  0xf6   : > { %v504_v4 = vpop.f32.mrf.mxu0 }
  0xf7   : > { %v539_v5 = vpop.f32.mrf.mxu1 }
  0xf8   : > { %v505_v7 = vpop.f32.mrf.mxu0 }
  0xf9   : > { %v540_v8 = vpop.f32.mrf.mxu1  ;;  %v506_v9 = vadd.f32 %v505_v7, %v504_v4 }
  0xfa   : > { %v541_v11 = vadd.f32 %v540_v8, %v539_v5 }
  0xfb   : > { %v311_v10 = vadd.f32 %v506_v9, %v466_v6 }
  0xfd   : > { %v381_v12 = vadd.f32 %v541_v11, %v311_v10 }
  0xff   : > { %385 = vst.msk [vmem:[%s163_s9] sm:$0xff] %vm384_vm0, %v381_v12 }
 0x100   : > { %594 = shalt.err (!%p591_p3)
}
 0x101   : > { %s595_s17 = scalar_lea.hbm %s398_s24, 128  ;;  %s599_s19 = scalar_lea.hbm %s954_s3, 256 }
 0x102   : > { %p596_p4 = scmp.ne.s32.totalorder %s398_s24, %s595_s17  ;;  %p600_p9 = scmp.lt.s32.totalorder %s398_s24, %s954_s3 }
 0x103   : > { %p601_p10 = scmp.lt.s32.totalorder %s599_s19, %s595_s17 }
 0x104   : > { %p597_p7 = pnand %p596_p4, %p702_p5 }
 0x105   : > { %p602_p11 = por %p601_p10, %p600_p9 }
 0x106   : > { %p598_p8 = pneg %p597_p7 }
 0x108   : > { %p603_p12 = pnand %p602_p11, %p598_p8 }
 0x10a   : > { %606 = shalt.err (!%p603_p12)
}
 0x10b   : > { %542 = dma.vmem_to_hbm [thread:$0]  (%p702_p5), %s401_s10, 128, %s398_s24, %s387_s25  }
 0x10c PF: > { %p548_p13 = scmp.ge.s32.totalorder %s641_s15, 2  ;;  %s412_s6 = sand.u32 1, %s629_s12  }
 0x10d   : > { %s413_s7 = scalar_lea.sflag [#allocation3], %s412_s6 }
 0x10e   : > { %p545_p0 = pnand %p548_p13, %p706_p6 }
 0x110   : > { %p546_p1 = pneg %p545_p0 }
 0x112   : > { %624 = dma.done.wait (%p546_p1), %s413_s7, 128  }
 0x113   : > { %626 = vsyncadd (%p546_p1), %s413_s7, 4294967168  ;;  %p13_p2 = scmp.ge.s32.totalorder %s689_s18, 4   ;;  %s957_s12 = smov %s633_s13 }
 0x114   : > { %s958_s13 = smov %s637_s14  ;;  %s959_s14 = smov %s700_s21 }
 0x115   : > { %s960_s15 = smov %s689_s18  ;;  %15 = sbr.rel (!%p13_p2) target bundleno = 3 (0x3), region = 67 }
 0x11a   :  { %418 = vsyncpa [#allocation3], 1 }
 0x11b   :  { %420 = vsyncpa [#allocation3 + $0x1], 1 }

</bundles_post_ra>
